<compile_context>
chip_gen: v5e
topology: v5e:2x2
jax: 0.10.0
libtpu: 0.0.40
codegen_flags: <defaults>
</compile_context>

<pallas_src>
import jax
import jax.numpy as jnp
from jax.experimental import pallas as pl
from jax.experimental.pallas import tpu as pltpu


# ---------------------------------------------------------------------------
# Kernel
# ---------------------------------------------------------------------------
def _upsample_kernel(x_ref, w_ref, b_ref, fm_ref, out_ref):
    # x_ref  : (1, TH, W, C)        TH input rows of one image (NHWC)
    # w_ref  : (C, Co)              1x1 conv weight in matmul form
    # b_ref  : (1, Co)              conv bias (always f32)
    # fm_ref : (1, 2*TH, W, 2*Co)   skip rows; column parity folded into channels
    # out_ref: (1, 2*TH, W, 4*Co)   per width cell: [conv|fm_even|conv|fm_odd]
    th, w, c = x_ref.shape[1], x_ref.shape[2], x_ref.shape[3]
    co = w_ref.shape[1]

    # 1x1 conv of TH rows as one matmul, f32 accumulate regardless of I/O dtype.
    x = x_ref[0].reshape(th * w, c)                                              # (TH*W, C)
    y = jnp.dot(x, w_ref[...], preferred_element_type=jnp.float32) + b_ref[...]  # (TH*W, Co)
    # Cast to output dtype BEFORE row duplication (halves the duplicated bytes).
    y = y.astype(out_ref.dtype).reshape(th, w, co)                               # (TH, W, Co)

    # Nearest row duplication (factor 2) over an untiled leading dim (cheap, no relayout).
    y_up = jnp.broadcast_to(y[:, None, :, :], (th, 2, w, co)).reshape(2 * th, w, co)

    fm = fm_ref[0].astype(out_ref.dtype)                                         # (2*TH, W, 2*Co)

    if co % 128 == 0:
        # Channel offsets are multiples of 128 lanes -> direct unmasked slice stores.
        out_ref[0, :, :, 0 * co:1 * co] = y_up                 # even col, conv half
        out_ref[0, :, :, 1 * co:2 * co] = fm[:, :, :co]        # even col, skip half
        out_ref[0, :, :, 2 * co:3 * co] = y_up                 # odd col, conv half
        out_ref[0, :, :, 3 * co:4 * co] = fm[:, :, co:]        # odd col, skip half
    else:
        # Co not a 128-lane multiple: assemble the full-width slab in-register and issue
        # a single full-lane store instead of four masked vst.msk stores.
        slab = jnp.concatenate([y_up, fm[:, :, :co], y_up, fm[:, :, co:]], axis=-1)
        out_ref[0] = slab


# ---------------------------------------------------------------------------
# Tiling / VMEM sizing
# ---------------------------------------------------------------------------
_MIN_GRID_STEPS = 4  # >= 2 steps per TensorCore on v7x (2 TCs); harmless on v5e/v6e.


def _vmem_config():
    """Generation-aware (block_budget_bytes, vmem_limit_bytes)."""
    try:
        cap = int(pltpu.get_tpu_info().vmem_capacity_bytes)
    except Exception:
        cap = 64 * 1024 * 1024                      # conservative fallback (v7x-sized)
    budget = min(cap // 2, 64 * 1024 * 1024)        # ~64 MiB on v5e/v6e, ~32 MiB on v7x
    limit = min((cap * 3) // 4, budget + 32 * 1024 * 1024)
    return budget, int(limit)


def _pick_tile_h(N, H, W, C, io_itemsize, budget_bytes):
    """Largest TH (divisor of H) whose working set fits the VMEM budget, with a
    lower clamp so the grid keeps >= _MIN_GRID_STEPS total steps (v7x megacore)."""
    co = C // 2
    # Double-buffered pipelined blocks per input row: x (W*C) + fm (2*W*C) + out (4*W*C).
    blocks = 7 * W * C * io_itemsize * 2
    # Single-buffered in-kernel intermediates: f32 conv acc + out-dtype y_up + slab.
    inter = (W * co * 4) + (2 * W * co * io_itemsize) + (2 * W * 4 * co * io_itemsize)
    per_row = blocks + inter
    th = max(1, min(H, budget_bytes // per_row))
    while H % th:
        th -= 1
    while th > 1 and N * (H // th) < _MIN_GRID_STEPS:
        th -= 1
        while H % th:
            th -= 1
    return th


# ---------------------------------------------------------------------------
# Wrappers
# ---------------------------------------------------------------------------
def upsample_forward_nhwc(x_nhwc, fm_nhwc, weight, bias, *, compute_dtype=jnp.float32):
    """NHWC-native UpSample: nearest 2x upsample -> 1x1 conv C->C/2 -> concat skip.

    x_nhwc : (N, H, W, C)
    fm_nhwc: (N, 2H, 2W, C//2)
    weight : (C//2, C, 1, 1)   (PyTorch Conv2d layout)
    bias   : (C//2,)
    returns: (N, 2H, 2W, C) in `compute_dtype`.
    """
    N, H, W, C = x_nhwc.shape
    Co = C // 2
    H2, W2 = 2 * H, 2 * W
    io_dtype = jnp.dtype(compute_dtype)

    x_in = x_nhwc.astype(io_dtype)
    # Fold column parity of the skip into channels: (N,2H,2W,Co) -> (N,2H,W,2Co). Free reshape.
    fm_flat = fm_nhwc.astype(io_dtype).reshape(N, H2, W, 2 * Co)
    w2d = jnp.transpose(weight.reshape(Co, C), (1, 0)).astype(io_dtype)   # (C, Co)
    b2d = bias.reshape(1, Co).astype(jnp.float32)                         # bias stays f32

    budget, vmem_limit = _vmem_config()
    TH = _pick_tile_h(N, H, W, C, io_dtype.itemsize, budget)
    grid = (N, H // TH)

    bytes_accessed = int((x_in.size + fm_flat.size + w2d.size) * io_dtype.itemsize
                         + b2d.size * 4
                         + N * H2 * W * 4 * Co * io_dtype.itemsize)
    cost = pl.CostEstimate(flops=2 * N * H * W * C * Co,
                           transcendentals=0,
                           bytes_accessed=bytes_accessed)

    out_flat = pl.pallas_call(
        _upsample_kernel,
        out_shape=jax.ShapeDtypeStruct((N, H2, W, 4 * Co), io_dtype),
        grid=grid,
        in_specs=[
            pl.BlockSpec((1, TH, W, C), lambda n, h: (n, h, 0, 0)),
            pl.BlockSpec((C, Co), lambda n, h: (0, 0)),
            pl.BlockSpec((1, Co), lambda n, h: (0, 0)),
            pl.BlockSpec((1, 2 * TH, W, 2 * Co), lambda n, h: (n, h, 0, 0)),
        ],
        out_specs=pl.BlockSpec((1, 2 * TH, W, 4 * Co), lambda n, h: (n, h, 0, 0)),
        compiler_params=pltpu.CompilerParams(
            dimension_semantics=("parallel", "parallel"),
            vmem_limit_bytes=vmem_limit),
        cost_estimate=cost,
    )(x_in, w2d, b2d, fm_flat)

    # (N,2H,W,4Co) == (N,2H,W,2,2Co) -> (N,2H,2W,2Co): free contiguous reshape.
    return out_flat.reshape(N, H2, W2, 2 * Co)


def upsample_forward(x_nchw, fm_nchw, weight, bias, *, compute_dtype=jnp.float32):
    """NCHW-compat wrapper (matches the PyTorch module's layout).

    TODO(synk): keep NHWC across adjacent U-Net layers to drop these boundary transposes
    entirely — they cost roughly the kernel's own HBM traffic again on a mem-bound op.
    """
    x_nhwc = jnp.transpose(x_nchw, (0, 2, 3, 1))
    fm_nhwc = jnp.transpose(fm_nchw, (0, 2, 3, 1))
    out_nhwc = upsample_forward_nhwc(x_nhwc, fm_nhwc, weight, bias,
                                     compute_dtype=compute_dtype)
    return jnp.transpose(out_nhwc, (0, 3, 1, 2))


def upsample_reference(x_nchw, fm_nchw, weight, bias):
    """Plain-JAX reference mirroring the PyTorch forward (for verification)."""
    up = jnp.repeat(jnp.repeat(x_nchw, 2, axis=2), 2, axis=3)              # nearest, scale 2
    w2d = weight.reshape(weight.shape[0], weight.shape[1])                 # (Co, C)
    out = jnp.einsum("nchw,oc->nohw", up, w2d) + bias[None, :, None, None]
    return jnp.concatenate([out, fm_nchw], axis=1)


if __name__ == "__main__":
    key = jax.random.PRNGKey(0)
    k1, k2, k3, k4 = jax.random.split(key, 4)

    N, C, H, W = 2, 4, 16, 16
    Co = C // 2

    x = jax.random.normal(k1, (N, C, H, W), dtype=jnp.float32)
    feature_map = jax.random.normal(k2, (N, Co, 2 * H, 2 * W), dtype=jnp.float32)

    # Deterministic Conv2d(channel, channel // 2, 1, 1) parameters.
    weight = jax.random.normal(k3, (Co, C, 1, 1), dtype=jnp.float32) * 0.1
    bias = jax.random.normal(k4, (Co,), dtype=jnp.float32) * 0.1

    ref = upsample_reference(x, feature_map, weight, bias)

    # f32 path (strict check).
    out_f32 = jax.block_until_ready(upsample_forward(x, feature_map, weight, bias))
    assert out_f32.shape == (N, C, 2 * H, 2 * W), out_f32.shape
    assert jnp.allclose(out_f32, ref, atol=1e-5, rtol=1e-5), "f32 mismatch vs reference"

    # bf16 I/O path (halves HBM bytes on a mem-bound op); f32 accumulate, relaxed tolerance.
    out_bf16 = jax.block_until_ready(
        upsample_forward(x, feature_map, weight, bias, compute_dtype=jnp.bfloat16))
    assert out_bf16.dtype == jnp.bfloat16
    assert jnp.allclose(out_bf16.astype(jnp.float32), ref, atol=5e-2, rtol=5e-2), \
        "bf16 mismatch vs reference"

    print("KERNEL_OK")
</pallas_src>

<mosaic_0001>
module attributes {stable_mosaic.version = 11 : i64} {
  func.func @_upsample_kernel(%arg0: i32, %arg1: i32, %arg2: memref<1x8x16x4xf32, #tpu.memory_space<vmem>>, %arg3: memref<4x2xf32, #tpu.memory_space<vmem>>, %arg4: memref<1x2xf32, #tpu.memory_space<vmem>>, %arg5: memref<1x16x16x4xf32, #tpu.memory_space<vmem>>, %arg6: memref<1x16x16x8xf32, #tpu.memory_space<vmem>>) attributes {dimension_semantics = [#tpu.dimension_semantics<parallel>, #tpu.dimension_semantics<parallel>], iteration_bounds = array<i64: 2, 2>, scalar_prefetch = 0 : i64, scratch_operands = 0 : i64, tpu.core_type = #tpu.core_type<tc>, window_params = [{transform_indices = @transform_0, window_bounds = array<i64: 1, 8, 16, 4>}, {pipeline_mode = #tpu.pipeline_mode<synchronous>, transform_indices = @transform_1, window_bounds = array<i64: 4, 2>}, {pipeline_mode = #tpu.pipeline_mode<synchronous>, transform_indices = @transform_2, window_bounds = array<i64: 1, 2>}, {transform_indices = @transform_3, window_bounds = array<i64: 1, 16, 16, 4>}, {transform_indices = @transform_4, window_bounds = array<i64: 1, 16, 16, 8>}]} {
    %c0 = arith.constant 0 : index
    %c0_0 = arith.constant 0 : index
    %c0_1 = arith.constant 0 : index
    %c0_2 = arith.constant 0 : index
    %0 = vector.load %arg2[%c0, %c0_0, %c0_1, %c0_2] : memref<1x8x16x4xf32, #tpu.memory_space<vmem>>, vector<1x8x16x4xf32>
    %1 = vector.shape_cast %0 : vector<1x8x16x4xf32> to vector<8x16x4xf32>
    %2 = vector.shape_cast %1 : vector<8x16x4xf32> to vector<128x4xf32>
    %c0_3 = arith.constant 0 : index
    %c0_4 = arith.constant 0 : index
    %3 = vector.load %arg3[%c0_3, %c0_4] : memref<4x2xf32, #tpu.memory_space<vmem>>, vector<4x2xf32>
    %cst = arith.constant dense<0.000000e+00> : vector<128x2xf32>
    %4 = tpu.matmul %2, %3, %cst {dimension_numbers = #tpu.dot_dimension_numbers<[1], [0], [0], [1], [0, 0, 1, 1], [], []>} : vector<128x4xf32>, vector<4x2xf32>, vector<128x2xf32> -> vector<128x2xf32>
    %c0_5 = arith.constant 0 : index
    %c0_6 = arith.constant 0 : index
    %5 = vector.load %arg4[%c0_5, %c0_6] : memref<1x2xf32, #tpu.memory_space<vmem>>, vector<1x2xf32>
    %6 = vector.broadcast %5 : vector<1x2xf32> to vector<128x2xf32>
    %7 = arith.addf %4, %6 : vector<128x2xf32>
    %8 = vector.shape_cast %7 : vector<128x2xf32> to vector<8x16x2xf32>
    %9 = vector.shape_cast %8 : vector<8x16x2xf32> to vector<8x1x16x2xf32>
    %10 = vector.shape_cast %9 : vector<8x1x16x2xf32> to vector<8x1x16x2xf32>
    %11 = vector.broadcast %10 : vector<8x1x16x2xf32> to vector<8x2x16x2xf32>
    %12 = vector.shape_cast %11 : vector<8x2x16x2xf32> to vector<16x16x2xf32>
    %c0_7 = arith.constant 0 : index
    %c0_8 = arith.constant 0 : index
    %c0_9 = arith.constant 0 : index
    %c0_10 = arith.constant 0 : index
    %13 = vector.load %arg5[%c0_7, %c0_8, %c0_9, %c0_10] : memref<1x16x16x4xf32, #tpu.memory_space<vmem>>, vector<1x16x16x4xf32>
    %14 = vector.shape_cast %13 : vector<1x16x16x4xf32> to vector<16x16x4xf32>
    %15 = vector.extract_strided_slice %14 {offsets = [0, 0, 0], sizes = [16, 16, 2], strides = [1, 1, 1]} : vector<16x16x4xf32> to vector<16x16x2xf32>
    %16 = vector.extract_strided_slice %14 {offsets = [0, 0, 2], sizes = [16, 16, 2], strides = [1, 1, 1]} : vector<16x16x4xf32> to vector<16x16x2xf32>
    %17 = tpu.concatenate %12, %15, %12, %16 in 2 : vector<16x16x2xf32>, vector<16x16x2xf32>, vector<16x16x2xf32>, vector<16x16x2xf32> -> vector<16x16x8xf32>
    %c0_11 = arith.constant 0 : index
    %c0_12 = arith.constant 0 : index
    %c0_13 = arith.constant 0 : index
    %c0_14 = arith.constant 0 : index
    %18 = vector.load %arg6[%c0_11, %c0_12, %c0_13, %c0_14] : memref<1x16x16x8xf32, #tpu.memory_space<vmem>>, vector<1x16x16x8xf32>
    %19 = vector.shape_cast %18 : vector<1x16x16x8xf32> to vector<16x16x8xf32>
    %20 = vector.shape_cast %17 : vector<16x16x8xf32> to vector<1x16x16x8xf32>
    tpu.vector_store %arg6[%c0_11, %c0_12, %c0_13, %c0_14], %20 {strides = array<i32>} : memref<1x16x16x8xf32, #tpu.memory_space<vmem>>, vector<1x16x16x8xf32>,
    return
  }
  func.func @transform_0(%arg0: i32, %arg1: i32) -> (i32, i32, i32, i32) {
    %c0_i32 = arith.constant 0 : i32
    %c0_i32_0 = arith.constant 0 : i32
    %c0_i32_1 = arith.constant 0 : i32
    return %arg0, %arg1, %c0_i32, %c0_i32_0 : i32, i32, i32, i32
  }
  func.func @transform_1(%arg0: i32, %arg1: i32) -> (i32, i32) {
    %c0_i32 = arith.constant 0 : i32
    %c0_i32_0 = arith.constant 0 : i32
    %c0_i32_1 = arith.constant 0 : i32
    return %c0_i32, %c0_i32_0 : i32, i32
  }
  func.func @transform_2(%arg0: i32, %arg1: i32) -> (i32, i32) {
    %c0_i32 = arith.constant 0 : i32
    %c0_i32_0 = arith.constant 0 : i32
    %c0_i32_1 = arith.constant 0 : i32
    return %c0_i32, %c0_i32_0 : i32, i32
  }
  func.func @transform_3(%arg0: i32, %arg1: i32) -> (i32, i32, i32, i32) {
    %c0_i32 = arith.constant 0 : i32
    %c0_i32_0 = arith.constant 0 : i32
    %c0_i32_1 = arith.constant 0 : i32
    return %arg0, %arg1, %c0_i32, %c0_i32_0 : i32, i32, i32, i32
  }
  func.func @transform_4(%arg0: i32, %arg1: i32) -> (i32, i32, i32, i32) {
    %c0_i32 = arith.constant 0 : i32
    %c0_i32_0 = arith.constant 0 : i32
    %c0_i32_1 = arith.constant 0 : i32
    return %arg0, %arg1, %c0_i32, %c0_i32_0 : i32, i32, i32, i32
  }
}

</mosaic_0001>

<bundles_post_ra>
// kernel: tpu_custom_call.1
= control target key start
LH: loop header
LB: loop body
LE: loop exit
PB: predicated region body
PF: predicated region fallthrough
CT: control target
= control target key end

     0   :  { %s1140_s15 = smov 0   ;;  %s1142_s16 = smov 0   ;;  %s1802_s0 = inlined_call_operand.vmem [shape: f32[2,16,16,4], index: 0, kind: input, shape index: {}]   ;;  %s1803_s1 = inlined_call_operand.vmem [shape: f32[4,2], index: 1, kind: input, shape index: {}]   ;;  %s1804_s2 = inlined_call_operand.vmem [shape: f32[1,2], index: 2, kind: input, shape index: {}]   ;;  %s1805_s3 = inlined_call_operand.vmem [shape: f32[2,32,16,4], index: 3, kind: input, shape index: {}]   ;;  %s1806_s4 = inlined_call_operand.vmem [shape: f32[2,32,16,8], index: 4, kind: output, shape index: {}]  }
   0x1   :  { %s1144_s17 = smov 0   ;;  %s1146_s18 = smov 0  }
   0x2   :  { %s1148_s19 = smov 0  }
   0x3 LB: > { %s23_s20 = sadd.s32 1, %s1103_s17  ;;  %s26_s21 = sadd.s32 1, %s1107_s18  ;;  %s1111_s19 = sphi %s1148_s19, %s14_s19   ;;  %s1107_s18 = sphi %s1146_s18, %s1810_s18   ;;  %s1103_s17 = sphi %s1144_s17, %s1809_s17   ;;  %s1099_s16 = sphi %s1142_s16, %s1808_s16   ;;  %s1095_s15 = sphi %s1140_s15, %s1807_s15  }
   0x4   : > { %p24_p0 = scmp.ge.s32.totalorder %s23_s20, 2  ;;  %p995_p1 = scmp.ge.s32.totalorder %s1111_s19, 1 }
   0x5   : > { %p202_p2 = scmp.lt.s32.totalorder %s1111_s19, 5 }
   0x6   : > { %s1812_s20 = smov (%p24_p0, %s23_s20), 0  ;;  %s1814_s21 = smov (!%p24_p0, %s26_s21), %s1107_s18 }
   0x7   : > { %p203_p3 = pnand %p995_p1, %p202_p2  ;;  %p28_p4 = scmp.ge.s32.totalorder %s1814_s21, 2 }
   0x8   : > { %p249_p5 = scmp.lt.s32.totalorder (!%p203_p3), %s1099_s16, 1  ;;  %s1000_s24 = sshll.u32 (!%p203_p3), %s1095_s15, 4 }
   0x9   : > { %s1816_s21 = smov (%p28_p4, %s1814_s21), 0  ;;  %206 = sbr.rel (%p203_p3) target bundleno = 356 (0x164), region = 36 }
   0xa   : > { %p262_p6 = scmp.lt.s32.totalorder (!%p203_p3), %s1000_s24, 31  ;;  %s996_s26 = sshll.u32 (!%p203_p3), %s1095_s15, 3 }
   0xb   : > { %p251_p7 = scmp.lt.s32.totalorder (!%p203_p3), %s996_s26, 15  ;;  %s1113_s8 = smov (!%p203_p3), 2  }
   0xc   : > { %s1114_s15 = smov (!%p203_p3), 4  }
   0xe   : > { %v297_v0 = vld [vmem:[%s1803_s1] sm:$0xf]  ;;  %vm351_vm0 = vcmask 1043456   ;;  %s1818_s16 = smov (!%p249_p5, %s1099_s16), 1  ;;  %s1820_s24 = smov (!%p262_p6, %s1000_s24), 31  ;;  %vm302_vm1 = vcmask 31744  }
   0xf   : > { %1008 = vmatpush.msk.msra.mxu0 %vm351_vm0, %v297_v0  ;;  %1027 = vmatpush.msk.msra.mxu1 %vm351_vm0, %v297_v0  ;;  %s1002_s25 = sshll.u32 %s1818_s16, 6  ;;  %s1001_s27 = sshll.u32 %s1820_s24, 1  ;;  %v1409_v58 = vld [vmem:[%s1804_s2] ss:$0 sm:$0xff]  ;;  %vm740_vm2 = vcmask 15360   ;;  %vm805_vm3 = vcmask 48128  }
  0x10   : > { %1028 = vmatpush.msk.msra.mxu2 %vm351_vm0, %v297_v0  ;;  %1029 = vmatpush.msk.msra.mxu3 %vm351_vm0, %v297_v0  ;;  %s1177_s28 = sadd.s32 %s1002_s25, %s1001_s27  ;;  %s998_s7 = sshll.u32 %s1818_s16, 5  ;;  %vm838_vm4 = vcmask 64512  }
  0x11   : > { %s1003_s29 = sshll.u32 %s1177_s28, 3  ;;  %s1822_s26 = smov (!%p251_p7, %s996_s26), 15 }
  0x12   : > { %s1185_s6 = scalar_lea.vmem %s1805_s3, %s1003_s29  ;;  %s997_s9 = sshll.u32 %s1822_s26, 1 }
  0x13   : > { %v1188_v1 = vld [vmem:[%s1185_s6 + $0x20] sm:$0xff]  ;;  %v1191_v2 = vld [vmem:[%s1185_s6 + $0x10] sm:$0xff]  ;;  %s255_s10 = sadd.s32 %s998_s7, %s997_s9  ;;  %v1208_v4 = vld [vmem:[%s1185_s6 + $0x28] sm:$0xff]  ;;  %s1604_s25 = scalar_lea.vmem %s1806_s4, %s1003_s29 }
  0x14   : > { %v1194_v3 = vld [vmem:[%s1185_s6] sm:$0xff]  ;;  %492 = vrot.lane.b32.xlu2 %v1188_v1, %s1113_s8  ;;  %488 = vrot.lane.b32.xlu1 %v1191_v2, %s1113_s8  ;;  %s999_s11 = sshll.u32 %s255_s10, 3  ;;  %v1211_v5 = vld [vmem:[%s1185_s6 + $0x18] sm:$0xff] }
  0x15   : > { %484 = vrot.lane.b32.xlu0 %v1194_v3, %s1113_s8  ;;  %s1205_s14 = scalar_lea.vmem %s1802_s0, %s999_s11  ;;  %v1220_v10 = vld [vmem:[%s1185_s6 + $0x8] sm:$0xff]  ;;  %v1235_v15 = vld [vmem:[%s1185_s6 + $0x40] sm:$0xff]  ;;  %v1238_v16 = vld [vmem:[%s1185_s6 + $0x38] sm:$0xff] }
  0x16   : > { %v281_v6 = vld [vmem:[%s1205_s14] sm:$0xff]  ;;  %v282_v11 = vld [vmem:[%s1205_s14 + $0x8] sm:$0xff]  ;;  %v1243_v17 = vld [vmem:[%s1185_s6 + $0x30] sm:$0xff] }
  0x17   : > { %v285_v7 = vld [vmem:[%s1205_s14 + $0x20] sm:$0xff]  ;;  %1009 = vmatmul.msk.f32.vlgmr.msra.gmra.mxu0 %vm302_vm1, %v281_v6  ;;  %v286_v12 = vld [vmem:[%s1205_s14 + $0x28] sm:$0xff]  ;;  %v283_v18 = vld [vmem:[%s1205_s14 + $0x10] sm:$0xff] }
  0x18   : > { %v289_v8 = vld [vmem:[%s1205_s14 + $0x40] sm:$0xff]  ;;  %1013 = vmatmul.msk.f32.vlgmr.msra.gmra.mxu1 %vm302_vm1, %v285_v7  ;;  %v290_v13 = vld [vmem:[%s1205_s14 + $0x48] sm:$0xff]  ;;  %v287_v19 = vld [vmem:[%s1205_s14 + $0x30] sm:$0xff] }
  0x19   : > { %v293_v9 = vld [vmem:[%s1205_s14 + $0x60] sm:$0xff]  ;;  %1017 = vmatmul.msk.f32.vlgmr.msra.gmra.mxu2 %vm302_vm1, %v289_v8  ;;  %v294_v14 = vld [vmem:[%s1205_s14 + $0x68] sm:$0xff]  ;;  %v291_v20 = vld [vmem:[%s1205_s14 + $0x50] sm:$0xff] }
  0x1a   : > { %1021 = vmatmul.msk.f32.vlgmr.msra.gmra.mxu3 %vm302_vm1, %v293_v9  ;;  %v295_v21 = vld [vmem:[%s1205_s14 + $0x70] sm:$0xff]  ;;  %v1258_v22 = vld [vmem:[%s1185_s6 + $0x58] sm:$0xff]  ;;  %v1266_v24 = vld [vmem:[%s1185_s6 + $0x48] sm:$0xff] }
  0x1b   : > { %v1261_v23 = vld [vmem:[%s1185_s6 + $0x50] sm:$0xff]  ;;  %v284_v25 = vld [vmem:[%s1205_s14 + $0x18] sm:$0xff]  ;;  %v433_v30 = vld [vmem:[%s1185_s6 + $0x68] sm:$0xff] }
  0x1c   : > { %494 = vrot.lane.b32.xlu2 %v1208_v4, %s1113_s8  ;;  %490 = vrot.lane.b32.xlu1 %v1211_v5, %s1113_s8  ;;  %v288_v26 = vld [vmem:[%s1205_s14 + $0x38] sm:$0xff]  ;;  %v434_v29 = vld [vmem:[%s1185_s6 + $0x70] sm:$0xff] }
  0x1d   : > { %486 = vrot.lane.b32.xlu0 %v1220_v10, %s1113_s8  ;;  %v292_v27 = vld [vmem:[%s1205_s14 + $0x58] sm:$0xff]  ;;  %v432_v31 = vld [vmem:[%s1185_s6 + $0x60] sm:$0xff]  ;;  %v1291_v32 = vld [vmem:[%s1185_s6 + $0x88] sm:$0xff] }
  0x1e   : > { %v296_v28 = vld [vmem:[%s1205_s14 + $0x78] sm:$0xff]  ;;  %v1294_v33 = vld [vmem:[%s1185_s6 + $0x80] sm:$0xff]  ;;  %v1312_v37 = vld [vmem:[%s1185_s6 + $0x90] sm:$0xff] }
  0x1f   : > { %1010 = vmatmul.msk.f32.gmra.mxu0 %vm302_vm1, %v282_v11  ;;  %v1297_v34 = vld [vmem:[%s1185_s6 + $0x78] sm:$0xff]  ;;  %v1306_v35 = vld [vmem:[%s1185_s6 + $0xa0] sm:$0xff]  ;;  %v1324_v39 = vld [vmem:[%s1185_s6 + $0xb0] sm:$0xff] }
  0x20   : > { %1014 = vmatmul.msk.f32.gmra.mxu1 %vm302_vm1, %v286_v12  ;;  %v1309_v36 = vld [vmem:[%s1185_s6 + $0x98] sm:$0xff]  ;;  %v1327_v40 = vld [vmem:[%s1185_s6 + $0xa8] sm:$0xff]  ;;  %v1336_v41 = vld [vmem:[%s1185_s6 + $0xd0] sm:$0xff] }
  0x21   : > { %1018 = vmatmul.msk.f32.gmra.mxu2 %vm302_vm1, %v290_v13  ;;  %v1321_v38 = vld [vmem:[%s1185_s6 + $0xb8] sm:$0xff]  ;;  %v1339_v42 = vld [vmem:[%s1185_s6 + $0xc8] sm:$0xff]  ;;  %v1342_v43 = vld [vmem:[%s1185_s6 + $0xc0] sm:$0xff] }
  0x22   : > { %1022 = vmatmul.msk.f32.gmra.mxu3 %vm302_vm1, %v294_v14  ;;  %v1351_v44 = vld [vmem:[%s1185_s6 + $0xe0] sm:$0xff]  ;;  %v1354_v45 = vld [vmem:[%s1185_s6 + $0xe8] sm:$0xff]  ;;  %v1357_v46 = vld [vmem:[%s1185_s6 + $0xd8] sm:$0xff] }
  0x23   : > { %v1366_v47 = vld [vmem:[%s1185_s6 + $0xf8] sm:$0xff]  ;;  %v1369_v48 = vld [vmem:[%s1185_s6 + $0xf0] sm:$0xff] }
  0x24   : > { %500 = vrot.lane.b32.xlu2 %v1235_v15, %s1113_s8  ;;  %498 = vrot.lane.b32.xlu1 %v1238_v16, %s1113_s8 }
  0x25   : > { %496 = vrot.lane.b32.xlu0 %v1243_v17, %s1113_s8 }
  0x27   : > { %1011 = vmatmul.msk.f32.gmra.mxu0 %vm302_vm1, %v283_v18 }
  0x28   : > { %1015 = vmatmul.msk.f32.gmra.mxu1 %vm302_vm1, %v287_v19 }
  0x29   : > { %1019 = vmatmul.msk.f32.gmra.mxu2 %vm302_vm1, %v291_v20 }
  0x2a   : > { %1023 = vmatmul.msk.f32.gmra.mxu3 %vm302_vm1, %v295_v21 }
  0x2c   : > { %506 = vrot.lane.b32.xlu2 %v1258_v22, %s1113_s8  ;;  %504 = vrot.lane.b32.xlu1 %v1261_v23, %s1113_s8 }
  0x2d   : > { %502 = vrot.lane.b32.xlu0 %v1266_v24, %s1113_s8 }
  0x2f   : > { %1012 = vmatmul.msk.f32.gmra.mxu0 %vm302_vm1, %v284_v25 }
  0x30   : > { %1016 = vmatmul.msk.f32.gmra.mxu1 %vm302_vm1, %v288_v26 }
  0x31   : > { %1020 = vmatmul.msk.f32.gmra.mxu2 %vm302_vm1, %v292_v27 }
  0x32   : > { %1024 = vmatmul.msk.f32.gmra.mxu3 %vm302_vm1, %v296_v28 }
  0x34   : > { %512 = vrot.lane.b32.xlu2 %v434_v29, %s1113_s8  ;;  %510 = vrot.lane.b32.xlu1 %v433_v30, %s1113_s8 }
  0x35   : > { %508 = vrot.lane.b32.xlu0 %v432_v31, %s1113_s8 }
  0x3c   : > { %518 = vrot.lane.b32.xlu2 %v1291_v32, %s1113_s8  ;;  %516 = vrot.lane.b32.xlu1 %v1294_v33, %s1113_s8 }
  0x3d   : > { %514 = vrot.lane.b32.xlu0 %v1297_v34, %s1113_s8 }
  0x44   : > { %524 = vrot.lane.b32.xlu2 %v1306_v35, %s1113_s8  ;;  %522 = vrot.lane.b32.xlu1 %v1309_v36, %s1113_s8 }
  0x45   : > { %520 = vrot.lane.b32.xlu0 %v1312_v37, %s1113_s8 }
  0x4c   : > { %530 = vrot.lane.b32.xlu2 %v1321_v38, %s1113_s8  ;;  %528 = vrot.lane.b32.xlu1 %v1324_v39, %s1113_s8 }
  0x4d   : > { %526 = vrot.lane.b32.xlu0 %v1327_v40, %s1113_s8 }
  0x54   : > { %536 = vrot.lane.b32.xlu2 %v1336_v41, %s1113_s8  ;;  %534 = vrot.lane.b32.xlu1 %v1339_v42, %s1113_s8 }
  0x55   : > { %532 = vrot.lane.b32.xlu0 %v1342_v43, %s1113_s8 }
  0x5c   : > { %540 = vrot.lane.b32.xlu1 %v1351_v44, %s1113_s8  ;;  %542 = vrot.lane.b32.xlu2 %v1354_v45, %s1113_s8 }
  0x5d   : > { %538 = vrot.lane.b32.xlu0 %v1357_v46, %s1113_s8 }
  0x64   : > { %546 = vrot.lane.b32.xlu1 %v1366_v47, %s1113_s8  ;;  %648 = vrot.lane.b32.xlu2 %v1191_v2, %s1114_s15 }
  0x65   : > { %544 = vrot.lane.b32.xlu0 %v1369_v48, %s1113_s8 }
  0x6c   : > { %646 = vrot.lane.b32.xlu1 %v1220_v10, %s1114_s15  ;;  %654 = vrot.lane.b32.xlu2 %v1208_v4, %s1114_s15 }
  0x6d   : > { %644 = vrot.lane.b32.xlu0 %v1194_v3, %s1114_s15 }
  0x6e   : > { %v1383_v49 = vpop.permute.xlu2 %492 }
  0x74   : > { %652 = vrot.lane.b32.xlu1 %v1188_v1, %s1114_s15  ;;  %660 = vrot.lane.b32.xlu2 %v1235_v15, %s1114_s15 }
  0x75   : > { %650 = vrot.lane.b32.xlu0 %v1211_v5, %s1114_s15 }
  0x76   : > { %v1391_v50 = vpop.permute.xlu2 %494 }
  0x7c   : > { %658 = vrot.lane.b32.xlu1 %v1238_v16, %s1114_s15  ;;  %666 = vrot.lane.b32.xlu2 %v1258_v22, %s1114_s15 }
  0x7d   : > { %656 = vrot.lane.b32.xlu0 %v1243_v17, %s1114_s15 }
  0x7e   : > { %v501_v51 = vpop.permute.xlu2 %500 }
  0x84   : > { %664 = vrot.lane.b32.xlu1 %v1261_v23, %s1114_s15  ;;  %672 = vrot.lane.b32.xlu2 %v434_v29, %s1114_s15 }
  0x85   : > { %662 = vrot.lane.b32.xlu0 %v1266_v24, %s1114_s15 }
  0x86   : > { %v507_v52 = vpop.permute.xlu2 %506  ;;  %v489_v53 = vpop.permute.xlu1 %488 }
  0x87   : > { %v485_v54 = vpop.permute.xlu0 %484 }
  0x8c   : > { %670 = vrot.lane.b32.xlu1 %v433_v30, %s1114_s15 }
  0x8d   : > { %668 = vrot.lane.b32.xlu0 %v432_v31, %s1114_s15 }
  0x8e   : > { %v513_v55 = vpop.permute.xlu2 %512  ;;  %v491_v56 = vpop.permute.xlu1 %490 }
  0x8f   : > { %v487_v57 = vpop.permute.xlu0 %486 }
  0x94   : > { %v372_v61 = vpop.f32.mrf.mxu0 }
  0x95   : > { %v384_v62 = vpop.f32.mrf.mxu1  ;;  %v373_v63 = vadd.f32 %v1409_v58, %v372_v61 }
  0x96   : > { %v519_v59 = vpop.permute.xlu2 %518  ;;  %v1411_v60 = vpop.permute.xlu1 %498  ;;  %v385_v0 = vadd.f32 %v1409_v58, %v384_v62 }
  0x97   : > { %v497_v1 = vpop.permute.xlu0 %496  ;;  %596 = vrot.lane.b32.xlu2 %v373_v63, %s1114_s15  ;;  %v1418_v2 = vsel %vm740_vm2, %v373_v63, %v485_v54  ;;  %v1421_v3 = vsel %vm740_vm2, %v373_v63, %v489_v53 }
  0x98   : > { %604 = vrot.lane.b32.xlu0 %v385_v0, %s1114_s15  ;;  %v1424_v4 = vsel %vm740_vm2, %v385_v0, %v501_v51 }
  0x9c   : > { %v396_v5 = vpop.f32.mrf.mxu2  ;;  %v375_v8 = vpop.f32.mrf.mxu0 }
  0x9d   : > { %v408_v6 = vpop.f32.mrf.mxu3  ;;  %v1427_v7 = vadd.f32 %v1409_v58, %v396_v5  ;;  %v387_v10 = vpop.f32.mrf.mxu1  ;;  %v376_v11 = vadd.f32 %v1409_v58, %v375_v8 }
  0x9e   : > { %v1430_v9 = vadd.f32 %v1409_v58, %v408_v6  ;;  %v388_v12 = vadd.f32 %v1409_v58, %v387_v10  ;;  %v525_v13 = vpop.permute.xlu2 %524  ;;  %v505_v14 = vpop.permute.xlu1 %504 }
  0x9f   : > { %612 = vrot.lane.b32.xlu1 %v1427_v7, %s1114_s15  ;;  %v1437_v15 = vsel %vm740_vm2, %v385_v0, %v505_v14  ;;  %v503_v16 = vpop.permute.xlu0 %502  ;;  %v1446_v18 = vsel %vm740_vm2, %v376_v11, %v487_v57  ;;  %v1449_v19 = vsel %vm740_vm2, %v376_v11, %v491_v56 }
  0xa0   : > { %598 = vrot.lane.b32.xlu0 %v376_v11, %s1114_s15  ;;  %620 = vrot.lane.b32.xlu2 %v1430_v9, %s1114_s15  ;;  %v1443_v17 = vsel %vm740_vm2, %v388_v12, %v503_v16  ;;  %v1452_v20 = vsel %vm740_vm2, %v388_v12, %v507_v52 }
  0xa4   : > { %v399_v21 = vpop.f32.mrf.mxu2  ;;  %v378_v23 = vpop.f32.mrf.mxu0 }
  0xa5   : > { %v411_v22 = vpop.f32.mrf.mxu3  ;;  %v400_v24 = vadd.f32 %v1409_v58, %v399_v21  ;;  %v390_v26 = vpop.f32.mrf.mxu1  ;;  %v379_v27 = vadd.f32 %v1409_v58, %v378_v23 }
  0xa6   : > { %v1456_v25 = vadd.f32 %v1409_v58, %v411_v22  ;;  %v391_v28 = vadd.f32 %v1409_v58, %v390_v26  ;;  %v531_v29 = vpop.permute.xlu2 %530  ;;  %v511_v30 = vpop.permute.xlu1 %510 }
  0xa7   : > { %606 = vrot.lane.b32.xlu1 %v388_v12, %s1114_s15  ;;  %v509_v31 = vpop.permute.xlu0 %508  ;;  %v1462_v51 = vsel %vm740_vm2, %v400_v24, %v519_v59  ;;  %v1475_v54 = vsel %vm740_vm2, %v379_v27, %v1383_v49  ;;  %v1478_v56 = vsel %vm740_vm2, %v379_v27, %v497_v1 }
  0xa8   : > { %622 = vrot.lane.b32.xlu0 %v1456_v25, %s1114_s15  ;;  %614 = vrot.lane.b32.xlu2 %v400_v24, %s1114_s15  ;;  %v1468_v52 = vsel %vm740_vm2, %v391_v28, %v509_v31  ;;  %v1471_v53 = vsel %vm740_vm2, %v391_v28, %v513_v55 }
  0xac   : > { %v402_v57 = vpop.f32.mrf.mxu2  ;;  %v381_v59 = vpop.f32.mrf.mxu0 }
  0xad   : > { %v403_v61 = vadd.f32 %v1409_v58, %v402_v57  ;;  %v393_v62 = vpop.f32.mrf.mxu1  ;;  %v382_v63 = vadd.f32 %v1409_v58, %v381_v59  ;;  %v414_v11 = vpop.f32.mrf.mxu3 }
  0xae   : > { %v394_v0 = vadd.f32 %v1409_v58, %v393_v62  ;;  %v537_v5 = vpop.permute.xlu2 %536  ;;  %v517_v6 = vpop.permute.xlu1 %516 }
  0xaf   : > { %600 = vrot.lane.b32.xlu1 %v379_v27, %s1114_s15  ;;  %v1486_v49 = vsel %vm740_vm2, %v1430_v9, %v537_v5  ;;  %v1490_v55 = vsel %vm740_vm2, %v1427_v7, %v517_v6  ;;  %v515_v1 = vpop.permute.xlu0 %514  ;;  %v1493_v8 = vsel %vm740_vm2, %v403_v61, %v525_v13  ;;  %v1502_v12 = vsel %vm740_vm2, %v382_v63, %v1391_v50 }
  0xb0   : > { %616 = vrot.lane.b32.xlu0 %v403_v61, %s1114_s15  ;;  %608 = vrot.lane.b32.xlu2 %v391_v28, %s1114_s15  ;;  %v1498_v10 = vsel %vm740_vm2, %v394_v0, %v515_v1  ;;  %v1506_v14 = vsel %vm740_vm2, %v382_v63, %v1411_v60  ;;  %v1509_v16 = vsel %vm740_vm2, %v394_v0, %v511_v30 }
  0xb1   : > { %v415_v13 = vadd.f32 %v1409_v58, %v414_v11 }
  0xb4   : > { %v405_v21 = vpop.f32.mrf.mxu2 }
  0xb5   : > { %v406_v22 = vadd.f32 %v1409_v58, %v405_v21  ;;  %v417_v57 = vpop.f32.mrf.mxu3 }
  0xb6   : > { %v523_v23 = vpop.permute.xlu1 %522  ;;  %v543_v26 = vpop.permute.xlu2 %542 }
  0xb7   : > { %624 = vrot.lane.b32.xlu1 %v415_v13, %s1114_s15  ;;  %v1515_v27 = vsel %vm740_vm2, %v400_v24, %v523_v23  ;;  %v521_v50 = vpop.permute.xlu0 %520  ;;  %v1518_v28 = vsel %vm740_vm2, %v406_v22, %v531_v29 }
  0xb8   : > { %610 = vrot.lane.b32.xlu0 %v394_v0, %s1114_s15  ;;  %602 = vrot.lane.b32.xlu2 %v382_v63, %s1114_s15  ;;  %v1524_v60 = vsel %vm740_vm2, %v1427_v7, %v521_v50  ;;  %v418_v7 = vadd.f32 %v1409_v58, %v417_v57 }
  0xba   : > { %v1540_v62 = vsel %vm740_vm2, %v418_v7, %v543_v26 }
  0xbe   : > { %v529_v30 = vpop.permute.xlu1 %528  ;;  %v649_v29 = vpop.permute.xlu2 %648 }
  0xbf   : > { %676 = vrot.lane.b32.xlu1 %v1294_v33, %s1114_s15  ;;  %v1529_v31 = vsel %vm740_vm2, %v403_v61, %v529_v30  ;;  %v527_v24 = vpop.permute.xlu0 %526 }
  0xc0   : > { %674 = vrot.lane.b32.xlu0 %v1297_v34, %s1114_s15  ;;  %678 = vrot.lane.b32.xlu2 %v1291_v32, %s1114_s15  ;;  %v1536_v59 = vsel %vm740_vm2, %v406_v22, %v527_v24 }
  0xc6   : > { %v535_v33 = vpop.permute.xlu1 %534  ;;  %v1552_v58 = vpop.permute.xlu2 %654 }
  0xc7   : > { %618 = vrot.lane.b32.xlu1 %v406_v22, %s1114_s15  ;;  %v1545_v61 = vsel %vm740_vm2, %v1456_v25, %v535_v33  ;;  %v533_v34 = vpop.permute.xlu0 %532 }
  0xc8   : > { %680 = vrot.lane.b32.xlu0 %v1312_v37, %s1114_s15  ;;  %626 = vrot.lane.b32.xlu2 %v418_v7, %s1114_s15  ;;  %v765_v32 = vsel %vm740_vm2, %v1430_v9, %v533_v34 }
  0xce   : > { %v541_v63 = vpop.permute.xlu1 %540  ;;  %v661_v9 = vpop.permute.xlu2 %660 }
  0xcf   : > { %682 = vrot.lane.b32.xlu1 %v1309_v36, %s1114_s15  ;;  %v1557_v0 = vsel %vm740_vm2, %v415_v13, %v541_v63  ;;  %v539_v5 = vpop.permute.xlu0 %538 }
  0xd0   : > { %686 = vrot.lane.b32.xlu0 %v1327_v40, %s1114_s15  ;;  %684 = vrot.lane.b32.xlu2 %v1306_v35, %s1114_s15  ;;  %v1565_v37 = vsel %vm740_vm2, %v1456_v25, %v539_v5 }
  0xd6   : > { %v547_v6 = vpop.permute.xlu1 %546  ;;  %v1579_v40 = vpop.permute.xlu2 %666 }
  0xd7   : > { %688 = vrot.lane.b32.xlu1 %v1324_v39, %s1114_s15  ;;  %v545_v36 = vpop.permute.xlu0 %544  ;;  %v1570_v1 = vsel %vm740_vm2, %v418_v7, %v547_v6 }
  0xd8   : > { %692 = vrot.lane.b32.xlu0 %v1342_v43, %s1114_s15  ;;  %690 = vrot.lane.b32.xlu2 %v1321_v38, %s1114_s15  ;;  %v1577_v35 = vsel %vm740_vm2, %v415_v13, %v545_v36 }
  0xde   : > { %v647_v25 = vpop.permute.xlu1 %646  ;;  %v673_v43 = vpop.permute.xlu2 %672 }
  0xdf   : > { %694 = vrot.lane.b32.xlu1 %v1339_v42, %s1114_s15  ;;  %v645_v39 = vpop.permute.xlu0 %644 }
  0xe0   : > { %698 = vrot.lane.b32.xlu0 %v1357_v46, %s1114_s15  ;;  %696 = vrot.lane.b32.xlu2 %v1336_v41, %s1114_s15 }
  0xe6   : > { %v1593_v42 = vpop.permute.xlu1 %652 }
  0xe7   : > { %700 = vrot.lane.b32.xlu1 %v1351_v44, %s1114_s15  ;;  %v651_v38 = vpop.permute.xlu0 %650 }
  0xe8   : > { %704 = vrot.lane.b32.xlu0 %v1369_v48, %s1114_s15  ;;  %702 = vrot.lane.b32.xlu2 %v1354_v45, %s1114_s15 }
  0xef   : > { %706 = vrot.lane.b32.xlu1 %v1366_v47, %s1114_s15  ;;  %v1597_v46 = vpop.permute.xlu0 %656  ;;  %v659_v47 = vpop.permute.xlu1 %658 }
  0xf1   : > { %v597_v41 = vpop.permute.xlu2 %596 }
  0xf2   : > { %v773_v44 = vsel %vm302_vm1, %v1418_v2, %v597_v41  ;;  %v775_v45 = vsel %vm302_vm1, %v1421_v3, %v597_v41 }
  0xf3   : > { %v806_v48 = vsel %vm805_vm3, %v773_v44, %v645_v39  ;;  %v808_v11 = vsel %vm805_vm3, %v775_v45, %v649_v29 }
  0xf4   : > { %839 = vst.msk [vmem:[%s1604_s25] sm:$0xff] %vm838_vm4, %v806_v48 }
  0xf5   : > { %841 = vst.msk [vmem:[%s1604_s25 + $0x10] sm:$0xff] %vm838_vm4, %v808_v11 }
  0xf7   : > { %v663_v13 = vpop.permute.xlu0 %662  ;;  %v665_v3 = vpop.permute.xlu1 %664 }
  0xfa   : > { %v621_v21 = vpop.permute.xlu2 %620 }
  0xfb   : > { %v1617_v22 = vsel %vm302_vm1, %v765_v32, %v621_v21  ;;  %v1621_v2 = vsel %vm302_vm1, %v1486_v49, %v621_v21 }
  0xff   : > { %v669_v23 = vpop.permute.xlu0 %668  ;;  %v671_v50 = vpop.permute.xlu1 %670 }
 0x102   : > { %v1623_v26 = vpop.permute.xlu2 %614 }
 0x10a   : > { %v605_v30 = vpop.permute.xlu0 %604  ;;  %v609_v24 = vpop.permute.xlu2 %608 }
 0x10b   : > { %v781_v57 = vsel %vm302_vm1, %v1424_v4, %v605_v30  ;;  %v783_v29 = vsel %vm302_vm1, %v1437_v15, %v605_v30  ;;  %v785_v49 = vsel %vm302_vm1, %v1468_v52, %v609_v24  ;;  %v787_v7 = vsel %vm302_vm1, %v1471_v53, %v609_v24 }
 0x10c   : > { %v814_v33 = vsel %vm805_vm3, %v781_v57, %v661_v9  ;;  %v816_v34 = vsel %vm805_vm3, %v783_v29, %v665_v3  ;;  %v818_v32 = vsel %vm805_vm3, %v785_v49, %v669_v23  ;;  %v820_v4 = vsel %vm805_vm3, %v787_v7, %v673_v43 }
 0x10d   : > { %847 = vst.msk [vmem:[%s1604_s25 + $0x40] sm:$0xff] %vm838_vm4, %v814_v33 }
 0x10e   : > { %849 = vst.msk [vmem:[%s1604_s25 + $0x50] sm:$0xff] %vm838_vm4, %v816_v34 }
 0x10f   : > { %851 = vst.msk [vmem:[%s1604_s25 + $0x60] sm:$0xff] %vm838_vm4, %v818_v32 }
 0x110   : > { %853 = vst.msk [vmem:[%s1604_s25 + $0x70] sm:$0xff] %vm838_vm4, %v820_v4 }
 0x111   : > { %v613_v15 = vpop.permute.xlu1 %612 }
 0x112   : > { %v599_v52 = vpop.permute.xlu0 %598  ;;  %v603_v53 = vpop.permute.xlu2 %602 }
 0x113   : > { %v774_v63 = vsel %vm302_vm1, %v1446_v18, %v599_v52  ;;  %v776_v5 = vsel %vm302_vm1, %v1449_v19, %v599_v52  ;;  %v778_v9 = vsel %vm302_vm1, %v1502_v12, %v603_v53  ;;  %v780_v6 = vsel %vm302_vm1, %v1506_v14, %v603_v53 }
 0x114   : > { %v807_v36 = vsel %vm805_vm3, %v774_v63, %v647_v25  ;;  %v809_v39 = vsel %vm805_vm3, %v776_v5, %v651_v38  ;;  %v811_v43 = vsel %vm805_vm3, %v778_v9, %v1552_v58  ;;  %v813_v18 = vsel %vm805_vm3, %v780_v6, %v659_v47 }
 0x115   : > { %840 = vst.msk [vmem:[%s1604_s25 + $0x8] sm:$0xff] %vm838_vm4, %v807_v36  ;;  %v790_v38 = vsel %vm302_vm1, %v1462_v51, %v1623_v26 }
 0x116   : > { %842 = vst.msk [vmem:[%s1604_s25 + $0x18] sm:$0xff] %vm838_vm4, %v809_v39 }
 0x117   : > { %844 = vst.msk [vmem:[%s1604_s25 + $0x28] sm:$0xff] %vm838_vm4, %v811_v43 }
 0x118   : > { %846 = vst.msk [vmem:[%s1604_s25 + $0x38] sm:$0xff] %vm838_vm4, %v813_v18 }
 0x119   : > { %v607_v19 = vpop.permute.xlu1 %606 }
 0x11a   : > { %v782_v12 = vsel %vm302_vm1, %v1443_v17, %v607_v19  ;;  %v784_v14 = vsel %vm302_vm1, %v1452_v20, %v607_v19  ;;  %v1670_v58 = vpop.permute.xlu0 %622  ;;  %v679_v25 = vpop.permute.xlu2 %678 }
 0x11b   : > { %v815_v41 = vsel %vm805_vm3, %v782_v12, %v663_v13  ;;  %v817_v44 = vsel %vm805_vm3, %v784_v14, %v1579_v40  ;;  %v823_v17 = vsel %vm805_vm3, %v790_v38, %v679_v25  ;;  %v798_v6 = vsel %vm302_vm1, %v1545_v61, %v1670_v58 }
 0x11c   : > { %848 = vst.msk [vmem:[%s1604_s25 + $0x48] sm:$0xff] %vm838_vm4, %v815_v41 }
 0x11d   : > { %850 = vst.msk [vmem:[%s1604_s25 + $0x58] sm:$0xff] %vm838_vm4, %v817_v44 }
 0x11e   : > { %856 = vst.msk [vmem:[%s1604_s25 + $0x88] sm:$0xff] %vm838_vm4, %v823_v17 }
 0x121   : > { %v601_v20 = vpop.permute.xlu1 %600 }
 0x122   : > { %v777_v45 = vsel %vm302_vm1, %v1475_v54, %v601_v20  ;;  %v779_v51 = vsel %vm302_vm1, %v1478_v56, %v601_v20  ;;  %v617_v47 = vpop.permute.xlu0 %616  ;;  %v1689_v48 = vpop.permute.xlu2 %626 }
 0x123   : > { %v810_v40 = vsel %vm805_vm3, %v777_v45, %v1593_v42  ;;  %v812_v11 = vsel %vm805_vm3, %v779_v51, %v1597_v46  ;;  %v793_v54 = vsel %vm302_vm1, %v1493_v8, %v617_v47  ;;  %v789_v46 = vsel %vm302_vm1, %v1490_v55, %v613_v15 }
 0x124   : > { %843 = vst.msk [vmem:[%s1604_s25 + $0x20] sm:$0xff] %vm838_vm4, %v810_v40  ;;  %v791_v55 = vsel %vm302_vm1, %v1524_v60, %v613_v15  ;;  %v802_v4 = vsel %vm302_vm1, %v1540_v62, %v1689_v48  ;;  %v795_v62 = vsel %vm302_vm1, %v1529_v31, %v617_v47  ;;  %v800_v31 = vsel %vm302_vm1, %v1565_v37, %v1670_v58 }
 0x125   : > { %845 = vst.msk [vmem:[%s1604_s25 + $0x30] sm:$0xff] %vm838_vm4, %v812_v11  ;;  %v804_v58 = vsel %vm302_vm1, %v1570_v1, %v1689_v48 }
 0x129   : > { %v625_v13 = vpop.permute.xlu1 %624 }
 0x12a   : > { %v611_v56 = vpop.permute.xlu0 %610  ;;  %v685_v21 = vpop.permute.xlu2 %684  ;;  %v801_v18 = vsel %vm302_vm1, %v1557_v0, %v625_v13  ;;  %v803_v61 = vsel %vm302_vm1, %v1577_v35, %v625_v13 }
 0x12b   : > { %v786_v3 = vsel %vm302_vm1, %v1509_v16, %v611_v56  ;;  %v826_v42 = vsel %vm805_vm3, %v793_v54, %v685_v21  ;;  %v788_v8 = vsel %vm302_vm1, %v1498_v10, %v611_v56 }
 0x12c   : > { %v819_v23 = vsel %vm805_vm3, %v786_v3, %v671_v50  ;;  %859 = vst.msk [vmem:[%s1604_s25 + $0xa0] sm:$0xff] %vm838_vm4, %v826_v42 }
 0x12d   : > { %852 = vst.msk [vmem:[%s1604_s25 + $0x68] sm:$0xff] %vm838_vm4, %v819_v23 }
 0x131   : > { %v677_v30 = vpop.permute.xlu1 %676 }
 0x132   : > { %v822_v24 = vsel %vm805_vm3, %v789_v46, %v677_v30  ;;  %v675_v16 = vpop.permute.xlu0 %674  ;;  %v691_v57 = vpop.permute.xlu2 %690 }
 0x133   : > { %855 = vst.msk [vmem:[%s1604_s25 + $0x80] sm:$0xff] %vm838_vm4, %v822_v24  ;;  %v821_v50 = vsel %vm805_vm3, %v788_v8, %v675_v16 }
 0x134   : > { %854 = vst.msk [vmem:[%s1604_s25 + $0x78] sm:$0xff] %vm838_vm4, %v821_v50 }
 0x139   : > { %v619_v29 = vpop.permute.xlu1 %618 }
 0x13a   : > { %v796_v49 = vsel %vm302_vm1, %v1518_v28, %v619_v29  ;;  %v681_v10 = vpop.permute.xlu0 %680  ;;  %v697_v7 = vpop.permute.xlu2 %696  ;;  %v792_v28 = vsel %vm302_vm1, %v1515_v27, %v1623_v26 }
 0x13b   : > { %v829_v33 = vsel %vm805_vm3, %v796_v49, %v691_v57  ;;  %v824_v34 = vsel %vm805_vm3, %v791_v55, %v681_v10  ;;  %v832_v32 = vsel %vm805_vm3, %v1621_v2, %v697_v7  ;;  %v794_v2 = vsel %vm302_vm1, %v1536_v59, %v619_v29 }
 0x13c   : > { %862 = vst.msk [vmem:[%s1604_s25 + $0xb8] sm:$0xff] %vm838_vm4, %v829_v33 }
 0x13d   : > { %857 = vst.msk [vmem:[%s1604_s25 + $0x90] sm:$0xff] %vm838_vm4, %v824_v34 }
 0x13e   : > { %865 = vst.msk [vmem:[%s1604_s25 + $0xd0] sm:$0xff] %vm838_vm4, %v832_v32 }
 0x141   : > { %v683_v60 = vpop.permute.xlu1 %682 }
 0x142   : > { %v825_v15 = vsel %vm805_vm3, %v792_v28, %v683_v60  ;;  %v687_v52 = vpop.permute.xlu0 %686  ;;  %v703_v53 = vpop.permute.xlu2 %702 }
 0x143   : > { %858 = vst.msk [vmem:[%s1604_s25 + $0x98] sm:$0xff] %vm838_vm4, %v825_v15  ;;  %v827_v63 = vsel %vm805_vm3, %v794_v2, %v687_v52  ;;  %v835_v27 = vsel %vm805_vm3, %v802_v4, %v703_v53 }
 0x144   : > { %860 = vst.msk [vmem:[%s1604_s25 + $0xa8] sm:$0xff] %vm838_vm4, %v827_v63 }
 0x145   : > { %868 = vst.msk [vmem:[%s1604_s25 + $0xe8] sm:$0xff] %vm838_vm4, %v835_v27 }
 0x149   : > { %v689_v59 = vpop.permute.xlu1 %688 }
 0x14a   : > { %v828_v26 = vsel %vm805_vm3, %v795_v62, %v689_v59  ;;  %v693_v5 = vpop.permute.xlu0 %692 }
 0x14b   : > { %861 = vst.msk [vmem:[%s1604_s25 + $0xb0] sm:$0xff] %vm838_vm4, %v828_v26  ;;  %v830_v9 = vsel %vm805_vm3, %v1617_v22, %v693_v5 }
 0x14c   : > { %863 = vst.msk [vmem:[%s1604_s25 + $0xc0] sm:$0xff] %vm838_vm4, %v830_v9 }
 0x151   : > { %v695_v36 = vpop.permute.xlu1 %694 }
 0x152   : > { %v831_v39 = vsel %vm805_vm3, %v798_v6, %v695_v36  ;;  %v699_v43 = vpop.permute.xlu0 %698 }
 0x153   : > { %864 = vst.msk [vmem:[%s1604_s25 + $0xc8] sm:$0xff] %vm838_vm4, %v831_v39  ;;  %v833_v22 = vsel %vm805_vm3, %v800_v31, %v699_v43 }
 0x154   : > { %866 = vst.msk [vmem:[%s1604_s25 + $0xd8] sm:$0xff] %vm838_vm4, %v833_v22 }
 0x159   : > { %v701_v19 = vpop.permute.xlu1 %700 }
 0x15a   : > { %v834_v12 = vsel %vm805_vm3, %v801_v18, %v701_v19  ;;  %v705_v37 = vpop.permute.xlu0 %704 }
 0x15b   : > { %867 = vst.msk [vmem:[%s1604_s25 + $0xe0] sm:$0xff] %vm838_vm4, %v834_v12  ;;  %v836_v14 = vsel %vm805_vm3, %v803_v61, %v705_v37 }
 0x15c   : > { %869 = vst.msk [vmem:[%s1604_s25 + $0xf0] sm:$0xff] %vm838_vm4, %v836_v14 }
 0x161   : > { %v707_v25 = vpop.permute.xlu1 %706 }
 0x162   : > { %v837_v0 = vsel %vm805_vm3, %v804_v58, %v707_v25 }
 0x163   : > { %870 = vst.msk [vmem:[%s1604_s25 + $0xf8] sm:$0xff] %vm838_vm4, %v837_v0 }
 0x164 PF: > { %s14_s19 = sadd.s32 1, %s1111_s19   ;;  %s1807_s15 = smov %s1103_s17 }
 0x165   : > { %p11_p8 = scmp.ge.s32.totalorder %s14_s19, 6   ;;  %s1808_s16 = smov %s1107_s18 }
 0x166   : > { %s1809_s17 = smov %s1812_s20  ;;  %s1810_s18 = smov %s1816_s21 }
 0x167   :  { %13 = sbr.rel (!%p11_p8) target bundleno = 3 (0x3), region = 69 }

</bundles_post_ra>
